<compile_context>
chip_gen: v6e
topology: v6e:2x2x1
jax: 0.10.0
libtpu: 0.0.40
codegen_flags: <defaults>
</compile_context>

<pallas_src>
import functools

import jax
import jax.numpy as jnp
from jax import lax
from jax.experimental import pallas as pl
from jax.experimental.pallas import tpu as pltpu

_EPS = 1e-12  # F.normalize eps


def _l2_normalize_rows(x):
    ssq = jnp.sum(x * x, axis=1, keepdims=True)
    # x / max(||x||, eps)  ==  x * rsqrt(max(||x||^2, eps^2))
    return x * lax.rsqrt(jnp.maximum(ssq, _EPS * _EPS))


def _super_triplet_kernel(q_ref, p_ref, negs_ref, amask_ref, out_ref, *,
                          margin, weight, lowe_sq, n, g, nneg, out_lanes):
    N, G = n, g
    GN = G * N                 # packed query/positive rows (lane-dense axis)
    GNn = G * nneg * N         # packed negative rows

    q = _l2_normalize_rows(q_ref[0])          # (GN, Dp)
    p = _l2_normalize_rows(p_ref[0])          # (GN, Dp)
    negs = _l2_normalize_rows(negs_ref[0])    # (GNn, Dp)

    # ---------------- query x positive squared distances ----------------
    # unit-norm rows -> ||a-b||^2 = 2 - 2 a.b ; argmins / ratio test identical to cdist
    gram = lax.dot_general(q, p, (((1,), (1,)), ((), ())),
                           preferred_element_type=jnp.float32)          # (GN, GN)
    dist_sq = jnp.maximum(2.0 - 2.0 * gram, 0.0)

    row_i = lax.broadcasted_iota(jnp.int32, (GN, 1), 0)
    col_j = lax.broadcasted_iota(jnp.int32, (1, GN), 1)

    # per-row / per-column triplet ids (division-free: G-1 compares)
    trip_row = jnp.zeros((GN, 1), jnp.int32)
    trip_col = jnp.zeros((1, GN), jnp.int32)
    for b in range(N, GN, N):
        trip_row = trip_row + (row_i >= b).astype(jnp.int32)
        trip_col = trip_col + (col_j >= b).astype(jnp.int32)

    if G > 1:  # mask cross-triplet blocks out of every min
        dist_m = jnp.where(trip_row == trip_col, dist_sq, jnp.inf)
    else:
        dist_m = dist_sq

    col_idx2 = lax.broadcasted_iota(jnp.int32, (GN, GN), 1)
    row_idx2 = lax.broadcasted_iota(jnp.int32, (GN, GN), 0)

    # best1[i] = argmin_j ; best2[j] = argmin_i  (first-index tie-break, like torch)
    min_row = jnp.min(dist_m, axis=1, keepdims=True)                    # (GN, 1)
    best1 = jnp.min(jnp.where(dist_m == min_row, col_idx2, GN),
                    axis=1, keepdims=True)                              # (GN, 1)
    min_col = jnp.min(dist_m, axis=0, keepdims=True)                    # (1, GN) = d_pos^2
    best2 = jnp.min(jnp.where(dist_m == min_col, row_idx2, GN),
                    axis=0, keepdims=True)                              # (1, GN)

    sel = row_i == best2                                                # one-hot columns
    sel_f = sel.astype(jnp.float32)

    # Lowe ratio test in squared space: (d1/d2)^2 <= th^2 ; 0/0 -> NaN -> False (as torch)
    second_col = jnp.min(jnp.where(sel, jnp.inf, dist_m), axis=0, keepdims=True)
    lowe_ok = (min_col / second_col) <= lowe_sq                         # (1, GN)

    # ---------------- negatives: one MXU call + masked segment mins ----------------
    gram_n = lax.dot_general(q, negs, (((1,), (1,)), ((), ())),
                             preferred_element_type=jnp.float32)        # (GN, GNn)
    dqn = jnp.maximum(2.0 - 2.0 * gram_n, 0.0)

    ncol = lax.broadcasted_iota(jnp.int32, (1, GNn), 1)
    ncol_trip = jnp.zeros((1, GNn), jnp.int32)
    for b in range(nneg * N, GNn, nneg * N):
        ncol_trip = ncol_trip + (ncol >= b).astype(jnp.int32)
    if G > 1:
        dqn_m = jnp.where(trip_row == ncol_trip, dqn, jnp.inf)
    else:
        dqn_m = dqn
    within = ncol - ncol_trip * (nneg * N)
    ncol_img = jnp.zeros((1, GNn), jnp.int32)
    for b in range(N, nneg * N, N):
        ncol_img = ncol_img + (within >= b).astype(jnp.int32)

    # per-negative-image min over masked lanes (no sub-tile lane slices of dqn)
    cols = [jnp.min(jnp.where(ncol_img == t, dqn_m, jnp.inf), axis=1, keepdims=True)
            for t in range(nneg)]                                       # nneg x (GN, 1)
    cols.append(best1.astype(jnp.float32))
    stacked = jnp.concatenate(cols, axis=1)                             # (GN, nneg+1)

    # single one-hot gather on the MXU: gathered[c, j] = stacked[best2[j], c]
    gathered = lax.dot_general(stacked, sel_f, (((0,), (0,)), ((), ())),
                               preferred_element_type=jnp.float32)      # (nneg+1, GN)
    d_neg = gathered[:nneg, :]                                          # (nneg, GN)
    best1_at_b2 = gathered[nneg:nneg + 1, :]                            # (1, GN)

    reciprocal = best1_at_b2 == col_j.astype(jnp.float32)               # mutual NN
    amask = amask_ref[0]                                                # (1, GN) {0,1}
    valid_f = (reciprocal & lowe_ok).astype(jnp.float32) * amask        # (1, GN)

    # triplet hinge: clamp(d_pos^2 - d_neg^2 + margin, 0), summed over negatives
    hinge = jnp.maximum(min_col - d_neg + margin, 0.0)                  # (nneg, GN)
    per_col = jnp.sum(hinge, axis=0, keepdims=True) * valid_f           # (1, GN)

    # per-triplet sums emitted as a tile-aligned (8, out_lanes) lane-dense block
    lane_c = lax.broadcasted_iota(jnp.int32, (GN, out_lanes), 1)
    seg = (lane_c == trip_row).astype(jnp.float32)                      # (GN, out_lanes)
    per_rows = jnp.broadcast_to(per_col, (8, GN))                       # pad M to 8
    out_rows = lax.dot_general(per_rows, seg, (((1,), (0,)), ((), ())),
                               preferred_element_type=jnp.float32)      # (8, out_lanes)
    out_ref[0] = out_rows * weight
    # TODO(synk): the optional `target` argument of the PyTorch forward is only an
    # assertion on its contents and does not affect the computation; it is ignored.


def superfeature_triplet_loss_batched(feats, attention, *, margin=1.1, weight=1.0,
                                      lowe_ratio_th=0.9):
    """feats: (B, T, N, D) superfeatures (T = 1 query + 1 positive + negatives),
    attention: (B, T, N). Returns (B,) f32 losses (sum over valid matches x negs)."""
    feats = jnp.asarray(feats, jnp.float32)
    attention = jnp.asarray(attention, jnp.float32)
    B, T, N, D = feats.shape
    nneg = T - 2
    assert nneg >= 1, "need at least one negative image (T >= 3)"

    # triplet packing factor: lane-dense (G*N)-wide working set per grid step, but
    # keep the grid length >= 2 when B >= 2 so both v7x TensorCores get work
    g_pack = max(1, 128 // N)
    G = g_pack if B >= 2 * g_pack else max(1, (B + 1) // 2)
    nb = -(-B // G)
    B_pad = nb * G

    # lane-align the feature dim (zero columns are exact for norms and dot products)
    Dp = -(-D // 128) * 128
    if Dp != D:
        feats = jnp.pad(feats, ((0, 0), (0, 0), (0, 0), (0, Dp - D)))
    if B_pad != B:
        feats = jnp.pad(feats, ((0, B_pad - B), (0, 0), (0, 0), (0, 0)))
        attention = jnp.pad(attention, ((0, B_pad - B), (0, 0), (0, 0)))

    q = feats[:, 0].reshape(nb, G * N, Dp)
    p = feats[:, 1].reshape(nb, G * N, Dp)
    negs = feats[:, 2:].reshape(nb, G * nneg * N, Dp)

    # attention top-k gate (k = N//2) computed wrapper-side; removes the O(N^2)
    # in-kernel rank construction and one DMA'd input stream. lax.top_k breaks ties
    # toward lower indices (first-index convention). Padded triplets are zeroed out.
    k = N // 2
    amask = jnp.zeros((B_pad, N), jnp.float32)
    if k > 0:
        _, topi = lax.top_k(attention[:, 1], k)                         # (B_pad, k)
        amask = amask.at[jnp.arange(B_pad)[:, None], topi].set(1.0)
    if B_pad != B:
        amask = amask * (jnp.arange(B_pad) < B).astype(jnp.float32)[:, None]
    amask = amask.reshape(nb, 1, G * N)

    OUT_LANES = 128
    kernel = functools.partial(
        _super_triplet_kernel, margin=float(margin), weight=float(weight),
        lowe_sq=float(lowe_ratio_th) ** 2, n=N, g=G, nneg=nneg, out_lanes=OUT_LANES)

    # explicit VMEM budget (v5e scoped default is only 16 MiB): rough upper bound of
    # double-buffered input blocks + the (GN x GN) / (GN x G*nneg*N) intermediates.
    gn, gnn = G * N, G * nneg * N
    est = 4 * (2 * (2 * gn * Dp + gnn * Dp + gn)
               + 6 * gn * gn + 3 * gn * gnn + 2 * (2 * gn + gnn) * Dp)
    vmem_limit = int(min(96 * 2 ** 20, max(32 * 2 ** 20, 2 * est)))
    # TODO(synk): at production N (~1k) with many negatives, move the negatives onto an
    # "arbitrary" grid axis with a VMEM accumulator to bound dqn on v7x (64 MiB VMEM).

    out = pl.pallas_call(
        kernel,
        out_shape=jax.ShapeDtypeStruct((nb, 8, OUT_LANES), jnp.float32),
        grid=(nb,),
        in_specs=[
            pl.BlockSpec((1, gn, Dp), lambda b: (b, 0, 0)),
            pl.BlockSpec((1, gn, Dp), lambda b: (b, 0, 0)),
            pl.BlockSpec((1, gnn, Dp), lambda b: (b, 0, 0)),
            pl.BlockSpec((1, 1, gn), lambda b: (b, 0, 0)),
        ],
        out_specs=pl.BlockSpec((1, 8, OUT_LANES), lambda b: (b, 0, 0)),
        compiler_params=pltpu.CompilerParams(
            dimension_semantics=("parallel",),
            vmem_limit_bytes=vmem_limit),
    )(q, p, negs, amask)

    return out[:, 0, :G].reshape(B_pad)[:B]


def superfeature_triplet_loss(feats, attention, *, margin=1.1, weight=1.0,
                              lowe_ratio_th=0.9):
    """Single tuple: feats (T, N, D), attention (T, N). Returns scalar f32 loss."""
    out = superfeature_triplet_loss_batched(feats[None], attention[None],
                                            margin=margin, weight=weight,
                                            lowe_ratio_th=lowe_ratio_th)
    return out[0]


if __name__ == "__main__":
    key = jax.random.PRNGKey(0)
    k1, k2, k3, k4, k5, k6 = jax.random.split(key, 6)
    T, N, D = 4, 16, 32            # query, positive, 2 negatives; 16 feats of dim 32

    # single tuple (scalar loss)
    feats = jax.random.normal(k1, (T, N, D), dtype=jnp.float32)
    attention = jax.random.uniform(k2, (T, N), dtype=jnp.float32)
    loss = superfeature_triplet_loss(feats, attention, margin=1.1, weight=1.0)
    jax.block_until_ready(loss)

    # batched path with batch padding and a 2-step "parallel" grid
    feats_b = jax.random.normal(k3, (5, T, N, D), dtype=jnp.float32)
    attn_b = jax.random.uniform(k4, (5, T, N), dtype=jnp.float32)
    losses = superfeature_triplet_loss_batched(feats_b, attn_b)
    jax.block_until_ready(losses)

    # larger batch exercising the fully lane-dense packing (G = 128 // N = 8)
    feats_c = jax.random.normal(k5, (16, T, N, D), dtype=jnp.float32)
    attn_c = jax.random.uniform(k6, (16, T, N), dtype=jnp.float32)
    losses_c = superfeature_triplet_loss_batched(feats_c, attn_c)
    jax.block_until_ready(losses_c)

    print("KERNEL_OK")
</pallas_src>

<mosaic_0001>
module attributes {stable_mosaic.version = 11 : i64} {
  func.func @_super_triplet_kernel(%arg0: i32, %arg1: memref<1x16x128xf32, #tpu.memory_space<vmem>>, %arg2: memref<1x16x128xf32, #tpu.memory_space<vmem>>, %arg3: memref<1x32x128xf32, #tpu.memory_space<vmem>>, %arg4: memref<1x1x16xf32, #tpu.memory_space<vmem>>, %arg5: memref<1x8x128xf32, #tpu.memory_space<vmem>>) attributes {dimension_semantics = [#tpu.dimension_semantics<parallel>], iteration_bounds = array<i64: 1>, scalar_prefetch = 0 : i64, scratch_operands = 0 : i64, tpu.core_type = #tpu.core_type<tc>, window_params = [{transform_indices = @transform_0, window_bounds = array<i64: 1, 16, 128>}, {transform_indices = @transform_1, window_bounds = array<i64: 1, 16, 128>}, {transform_indices = @transform_2, window_bounds = array<i64: 1, 32, 128>}, {transform_indices = @transform_3, window_bounds = array<i64: 1, 1, 16>}, {transform_indices = @transform_4, window_bounds = array<i64: 1, 8, 128>}]} {
    %c0 = arith.constant 0 : index
    %c0_0 = arith.constant 0 : index
    %c0_1 = arith.constant 0 : index
    %0 = vector.load %arg1[%c0, %c0_0, %c0_1] : memref<1x16x128xf32, #tpu.memory_space<vmem>>, vector<1x16x128xf32>
    %1 = vector.shape_cast %0 : vector<1x16x128xf32> to vector<16x128xf32>
    %2 = arith.mulf %1, %1 : vector<16x128xf32>
    %cst = arith.constant dense<0.000000e+00> : vector<16xf32>
    %3 = vector.multi_reduction <add>, %2, %cst [1] : vector<16x128xf32> to vector<16xf32>
    %4 = vector.shape_cast %3 : vector<16xf32> to vector<16x1xf32>
    %cst_2 = arith.constant 1.000000e-24 : f32
    %5 = vector.broadcast %cst_2 : f32 to vector<16x1xf32>
    %6 = arith.maximumf %4, %5 : vector<16x1xf32>
    %7 = math.rsqrt %6 : vector<16x1xf32>
    %8 = vector.broadcast %7 : vector<16x1xf32> to vector<16x128xf32>
    %9 = arith.mulf %1, %8 : vector<16x128xf32>
    %c0_3 = arith.constant 0 : index
    %c0_4 = arith.constant 0 : index
    %c0_5 = arith.constant 0 : index
    %10 = vector.load %arg2[%c0_3, %c0_4, %c0_5] : memref<1x16x128xf32, #tpu.memory_space<vmem>>, vector<1x16x128xf32>
    %11 = vector.shape_cast %10 : vector<1x16x128xf32> to vector<16x128xf32>
    %12 = arith.mulf %11, %11 : vector<16x128xf32>
    %cst_6 = arith.constant dense<0.000000e+00> : vector<16xf32>
    %13 = vector.multi_reduction <add>, %12, %cst_6 [1] : vector<16x128xf32> to vector<16xf32>
    %14 = vector.shape_cast %13 : vector<16xf32> to vector<16x1xf32>
    %cst_7 = arith.constant 1.000000e-24 : f32
    %15 = vector.broadcast %cst_7 : f32 to vector<16x1xf32>
    %16 = arith.maximumf %14, %15 : vector<16x1xf32>
    %17 = math.rsqrt %16 : vector<16x1xf32>
    %18 = vector.broadcast %17 : vector<16x1xf32> to vector<16x128xf32>
    %19 = arith.mulf %11, %18 : vector<16x128xf32>
    %c0_8 = arith.constant 0 : index
    %c0_9 = arith.constant 0 : index
    %c0_10 = arith.constant 0 : index
    %20 = vector.load %arg3[%c0_8, %c0_9, %c0_10] : memref<1x32x128xf32, #tpu.memory_space<vmem>>, vector<1x32x128xf32>
    %21 = vector.shape_cast %20 : vector<1x32x128xf32> to vector<32x128xf32>
    %22 = arith.mulf %21, %21 : vector<32x128xf32>
    %cst_11 = arith.constant dense<0.000000e+00> : vector<32xf32>
    %23 = vector.multi_reduction <add>, %22, %cst_11 [1] : vector<32x128xf32> to vector<32xf32>
    %24 = vector.shape_cast %23 : vector<32xf32> to vector<32x1xf32>
    %cst_12 = arith.constant 1.000000e-24 : f32
    %25 = vector.broadcast %cst_12 : f32 to vector<32x1xf32>
    %26 = arith.maximumf %24, %25 : vector<32x1xf32>
    %27 = math.rsqrt %26 : vector<32x1xf32>
    %28 = vector.broadcast %27 : vector<32x1xf32> to vector<32x128xf32>
    %29 = arith.mulf %21, %28 : vector<32x128xf32>
    %cst_13 = arith.constant dense<0.000000e+00> : vector<16x16xf32>
    %30 = tpu.matmul %9, %19, %cst_13 {dimension_numbers = #tpu.dot_dimension_numbers<[1], [1], [0], [0], [0, 0, 1, 0], [], []>} : vector<16x128xf32>, vector<16x128xf32>, vector<16x16xf32> -> vector<16x16xf32>
    %cst_14 = arith.constant 2.000000e+00 : f32
    %31 = vector.broadcast %cst_14 : f32 to vector<16x16xf32>
    %32 = arith.mulf %31, %30 : vector<16x16xf32>
    %cst_15 = arith.constant 2.000000e+00 : f32
    %33 = vector.broadcast %cst_15 : f32 to vector<16x16xf32>
    %34 = arith.subf %33, %32 : vector<16x16xf32>
    %cst_16 = arith.constant 0.000000e+00 : f32
    %35 = vector.broadcast %cst_16 : f32 to vector<16x16xf32>
    %36 = arith.maximumf %34, %35 : vector<16x16xf32>
    %37 = tpu.iota {dimensions = array<i32: 0>} : vector<16x1xi32>
    %38 = tpu.iota {dimensions = array<i32: 1>} : vector<1x16xi32>
    %c0_i32 = arith.constant 0 : i32
    %39 = vector.broadcast %c0_i32 : i32 to vector<16x1xi32>
    %40 = tpu.iota {dimensions = array<i32: 1>} : vector<16x16xi32>
    %41 = tpu.iota {dimensions = array<i32: 0>} : vector<16x16xi32>
    %cst_17 = arith.constant dense<0x7F800000> : vector<16xf32>
    %42 = vector.multi_reduction <minimumf>, %36, %cst_17 [1] : vector<16x16xf32> to vector<16xf32>
    %43 = vector.shape_cast %42 : vector<16xf32> to vector<16x1xf32>
    %44 = vector.broadcast %43 : vector<16x1xf32> to vector<16x16xf32>
    %45 = arith.cmpf oeq, %36, %44 : vector<16x16xf32>
    %c16_i32 = arith.constant 16 : i32
    %46 = vector.broadcast %c16_i32 : i32 to vector<16x16xi32>
    %47 = arith.select %45, %40, %46 : vector<16x16xi1>, vector<16x16xi32>
    %cst_18 = arith.constant dense<2147483647> : vector<16xi32>
    %48 = vector.multi_reduction <minsi>, %47, %cst_18 [1] : vector<16x16xi32> to vector<16xi32>
    %49 = vector.shape_cast %48 : vector<16xi32> to vector<16x1xi32>
    %cst_19 = arith.constant dense<0x7F800000> : vector<16xf32>
    %50 = vector.multi_reduction <minimumf>, %36, %cst_19 [0] : vector<16x16xf32> to vector<16xf32>
    %51 = vector.shape_cast %50 : vector<16xf32> to vector<1x16xf32>
    %52 = vector.broadcast %51 : vector<1x16xf32> to vector<16x16xf32>
    %53 = arith.cmpf oeq, %36, %52 : vector<16x16xf32>
    %c16_i32_20 = arith.constant 16 : i32
    %54 = vector.broadcast %c16_i32_20 : i32 to vector<16x16xi32>
    %55 = arith.select %53, %41, %54 : vector<16x16xi1>, vector<16x16xi32>
    %cst_21 = arith.constant dense<2147483647> : vector<16xi32>
    %56 = vector.multi_reduction <minsi>, %55, %cst_21 [0] : vector<16x16xi32> to vector<16xi32>
    %57 = vector.shape_cast %56 : vector<16xi32> to vector<1x16xi32>
    %58 = vector.broadcast %37 : vector<16x1xi32> to vector<16x16xi32>
    %59 = vector.broadcast %57 : vector<1x16xi32> to vector<16x16xi32>
    %60 = arith.cmpi eq, %58, %59 : vector<16x16xi32>
    %61 = arith.extui %60 : vector<16x16xi1> to vector<16x16xi32>
    %62 = arith.sitofp %61 : vector<16x16xi32> to vector<16x16xf32>
    %cst_22 = arith.constant 0x7F800000 : f32
    %63 = vector.broadcast %cst_22 : f32 to vector<16x16xf32>
    %64 = arith.select %60, %63, %36 : vector<16x16xi1>, vector<16x16xf32>
    %cst_23 = arith.constant dense<0x7F800000> : vector<16xf32>
    %65 = vector.multi_reduction <minimumf>, %64, %cst_23 [0] : vector<16x16xf32> to vector<16xf32>
    %66 = vector.shape_cast %65 : vector<16xf32> to vector<1x16xf32>
    %67 = arith.divf %51, %66 : vector<1x16xf32>
    %cst_24 = arith.constant 8.100000e-01 : f32
    %68 = vector.broadcast %cst_24 : f32 to vector<1x16xf32>
    %69 = arith.cmpf ole, %67, %68 : vector<1x16xf32>
    %cst_25 = arith.constant dense<0.000000e+00> : vector<16x32xf32>
    %70 = tpu.matmul %9, %29, %cst_25 {dimension_numbers = #tpu.dot_dimension_numbers<[1], [1], [0], [0], [0, 0, 1, 0], [], []>} : vector<16x128xf32>, vector<32x128xf32>, vector<16x32xf32> -> vector<16x32xf32>
    %cst_26 = arith.constant 2.000000e+00 : f32
    %71 = vector.broadcast %cst_26 : f32 to vector<16x32xf32>
    %72 = arith.mulf %71, %70 : vector<16x32xf32>
    %cst_27 = arith.constant 2.000000e+00 : f32
    %73 = vector.broadcast %cst_27 : f32 to vector<16x32xf32>
    %74 = arith.subf %73, %72 : vector<16x32xf32>
    %cst_28 = arith.constant 0.000000e+00 : f32
    %75 = vector.broadcast %cst_28 : f32 to vector<16x32xf32>
    %76 = arith.maximumf %74, %75 : vector<16x32xf32>
    %77 = tpu.iota {dimensions = array<i32: 1>} : vector<1x32xi32>
    %c0_i32_29 = arith.constant 0 : i32
    %78 = vector.broadcast %c0_i32_29 : i32 to vector<1x32xi32>
    %c32_i32 = arith.constant 32 : i32
    %79 = vector.broadcast %c32_i32 : i32 to vector<1x32xi32>
    %80 = arith.muli %78, %79 : vector<1x32xi32>
    %81 = arith.subi %77, %80 : vector<1x32xi32>
    %c0_i32_30 = arith.constant 0 : i32
    %82 = vector.broadcast %c0_i32_30 : i32 to vector<1x32xi32>
    %c16_i32_31 = arith.constant 16 : i32
    %83 = vector.broadcast %c16_i32_31 : i32 to vector<1x32xi32>
    %84 = arith.cmpi sge, %81, %83 : vector<1x32xi32>
    %85 = arith.extui %84 : vector<1x32xi1> to vector<1x32xi32>
    %86 = arith.addi %82, %85 : vector<1x32xi32>
    %c0_i32_32 = arith.constant 0 : i32
    %87 = vector.broadcast %c0_i32_32 : i32 to vector<1x32xi32>
    %88 = arith.cmpi eq, %86, %87 : vector<1x32xi32>
    %cst_33 = arith.constant 0x7F800000 : f32
    %89 = vector.shape_cast %88 : vector<1x32xi1> to vector<1x32xi1>
    %90 = vector.broadcast %89 : vector<1x32xi1> to vector<16x32xi1>
    %91 = vector.broadcast %cst_33 : f32 to vector<16x32xf32>
    %92 = arith.select %90, %76, %91 : vector<16x32xi1>, vector<16x32xf32>
    %cst_34 = arith.constant dense<0x7F800000> : vector<16xf32>
    %93 = vector.multi_reduction <minimumf>, %92, %cst_34 [1] : vector<16x32xf32> to vector<16xf32>
    %94 = vector.shape_cast %93 : vector<16xf32> to vector<16x1xf32>
    %c1_i32 = arith.constant 1 : i32
    %95 = vector.broadcast %c1_i32 : i32 to vector<1x32xi32>
    %96 = arith.cmpi eq, %86, %95 : vector<1x32xi32>
    %cst_35 = arith.constant 0x7F800000 : f32
    %97 = vector.shape_cast %96 : vector<1x32xi1> to vector<1x32xi1>
    %98 = vector.broadcast %97 : vector<1x32xi1> to vector<16x32xi1>
    %99 = vector.broadcast %cst_35 : f32 to vector<16x32xf32>
    %100 = arith.select %98, %76, %99 : vector<16x32xi1>, vector<16x32xf32>
    %cst_36 = arith.constant dense<0x7F800000> : vector<16xf32>
    %101 = vector.multi_reduction <minimumf>, %100, %cst_36 [1] : vector<16x32xf32> to vector<16xf32>
    %102 = vector.shape_cast %101 : vector<16xf32> to vector<16x1xf32>
    %103 = arith.sitofp %49 : vector<16x1xi32> to vector<16x1xf32>
    %104 = tpu.concatenate %94, %102, %103 in 1 : vector<16x1xf32>, vector<16x1xf32>, vector<16x1xf32> -> vector<16x3xf32>
    %cst_37 = arith.constant dense<0.000000e+00> : vector<3x16xf32>
    %105 = tpu.matmul %104, %62, %cst_37 {dimension_numbers = #tpu.dot_dimension_numbers<[0], [0], [1], [1], [0, 1, 1, 1], [], []>} : vector<16x3xf32>, vector<16x16xf32>, vector<3x16xf32> -> vector<3x16xf32>
    %106 = vector.extract_strided_slice %105 {offsets = [0, 0], sizes = [2, 16], strides = [1, 1]} : vector<3x16xf32> to vector<2x16xf32>
    %107 = vector.extract_strided_slice %105 {offsets = [2, 0], sizes = [1, 16], strides = [1, 1]} : vector<3x16xf32> to vector<1x16xf32>
    %108 = arith.sitofp %38 : vector<1x16xi32> to vector<1x16xf32>
    %109 = arith.cmpf oeq, %107, %108 : vector<1x16xf32>
    %c0_38 = arith.constant 0 : index
    %c0_39 = arith.constant 0 : index
    %c0_40 = arith.constant 0 : index
    %110 = vector.load %arg4[%c0_38, %c0_39, %c0_40] : memref<1x1x16xf32, #tpu.memory_space<vmem>>, vector<1x1x16xf32>
    %111 = vector.shape_cast %110 : vector<1x1x16xf32> to vector<1x16xf32>
    %112 = arith.andi %109, %69 : vector<1x16xi1>
    %113 = arith.extui %112 : vector<1x16xi1> to vector<1x16xi32>
    %114 = arith.sitofp %113 : vector<1x16xi32> to vector<1x16xf32>
    %115 = arith.mulf %114, %111 : vector<1x16xf32>
    %116 = vector.broadcast %51 : vector<1x16xf32> to vector<2x16xf32>
    %117 = arith.subf %116, %106 : vector<2x16xf32>
    %cst_41 = arith.constant 1.100000e+00 : f32
    %118 = vector.broadcast %cst_41 : f32 to vector<2x16xf32>
    %119 = arith.addf %117, %118 : vector<2x16xf32>
    %cst_42 = arith.constant 0.000000e+00 : f32
    %120 = vector.broadcast %cst_42 : f32 to vector<2x16xf32>
    %121 = arith.maximumf %119, %120 : vector<2x16xf32>
    %cst_43 = arith.constant dense<0.000000e+00> : vector<16xf32>
    %122 = vector.multi_reduction <add>, %121, %cst_43 [0] : vector<2x16xf32> to vector<16xf32>
    %123 = vector.shape_cast %122 : vector<16xf32> to vector<1x16xf32>
    %124 = arith.mulf %123, %115 : vector<1x16xf32>
    %125 = tpu.iota {dimensions = array<i32: 1>} : vector<16x128xi32>
    %126 = vector.broadcast %39 : vector<16x1xi32> to vector<16x128xi32>
    %127 = arith.cmpi eq, %125, %126 : vector<16x128xi32>
    %128 = arith.extui %127 : vector<16x128xi1> to vector<16x128xi32>
    %129 = arith.sitofp %128 : vector<16x128xi32> to vector<16x128xf32>
    %130 = vector.shape_cast %124 : vector<1x16xf32> to vector<1x16xf32>
    %131 = vector.broadcast %130 : vector<1x16xf32> to vector<8x16xf32>
    %cst_44 = arith.constant dense<0.000000e+00> : vector<8x128xf32>
    %132 = tpu.matmul %131, %129, %cst_44 {dimension_numbers = #tpu.dot_dimension_numbers<[1], [0], [0], [1], [0, 0, 1, 1], [], []>} : vector<8x16xf32>, vector<16x128xf32>, vector<8x128xf32> -> vector<8x128xf32>
    %cst_45 = arith.constant 1.000000e+00 : f32
    %133 = vector.broadcast %cst_45 : f32 to vector<8x128xf32>
    %134 = arith.mulf %132, %133 : vector<8x128xf32>
    %c0_46 = arith.constant 0 : index
    %c0_47 = arith.constant 0 : index
    %c0_48 = arith.constant 0 : index
    %135 = vector.load %arg5[%c0_46, %c0_47, %c0_48] : memref<1x8x128xf32, #tpu.memory_space<vmem>>, vector<1x8x128xf32>
    %136 = vector.shape_cast %135 : vector<1x8x128xf32> to vector<8x128xf32>
    %137 = vector.shape_cast %134 : vector<8x128xf32> to vector<1x8x128xf32>
    tpu.vector_store %arg5[%c0_46, %c0_47, %c0_48], %137 {strides = array<i32>} : memref<1x8x128xf32, #tpu.memory_space<vmem>>, vector<1x8x128xf32>,
    return
  }
  func.func @transform_0(%arg0: i32) -> (i32, i32, i32) {
    %c0_i32 = arith.constant 0 : i32
    %c0_i32_0 = arith.constant 0 : i32
    %c0_i32_1 = arith.constant 0 : i32
    return %arg0, %c0_i32, %c0_i32_0 : i32, i32, i32
  }
  func.func @transform_1(%arg0: i32) -> (i32, i32, i32) {
    %c0_i32 = arith.constant 0 : i32
    %c0_i32_0 = arith.constant 0 : i32
    %c0_i32_1 = arith.constant 0 : i32
    return %arg0, %c0_i32, %c0_i32_0 : i32, i32, i32
  }
  func.func @transform_2(%arg0: i32) -> (i32, i32, i32) {
    %c0_i32 = arith.constant 0 : i32
    %c0_i32_0 = arith.constant 0 : i32
    %c0_i32_1 = arith.constant 0 : i32
    return %arg0, %c0_i32, %c0_i32_0 : i32, i32, i32
  }
  func.func @transform_3(%arg0: i32) -> (i32, i32, i32) {
    %c0_i32 = arith.constant 0 : i32
    %c0_i32_0 = arith.constant 0 : i32
    %c0_i32_1 = arith.constant 0 : i32
    return %arg0, %c0_i32, %c0_i32_0 : i32, i32, i32
  }
  func.func @transform_4(%arg0: i32) -> (i32, i32, i32) {
    %c0_i32 = arith.constant 0 : i32
    %c0_i32_0 = arith.constant 0 : i32
    %c0_i32_1 = arith.constant 0 : i32
    return %arg0, %c0_i32, %c0_i32_0 : i32, i32, i32
  }
}

</mosaic_0001>

<bundles_post_ra>
// kernel: tpu_custom_call.1
= control target key start
LH: loop header
LB: loop body
LE: loop exit
PB: predicated region body
PF: predicated region fallthrough
CT: control target
= control target key end

     0   :  { %9 = vsyncpa [#allocation3], 0  ;;  %s897_s0 = inlined_call_operand.hbm [shape: f32[1,16,128], index: 0, kind: input, shape index: {}]   ;;  %s898_s1 = inlined_call_operand.hbm [shape: f32[1,16,128], index: 1, kind: input, shape index: {}]   ;;  %s899_s2 = inlined_call_operand.hbm [shape: f32[1,32,128], index: 2, kind: input, shape index: {}]   ;;  %s900_s3 = inlined_call_operand.vmem [shape: f32[1,1,16], index: 3, kind: input, shape index: {}]   ;;  %s901_s4 = inlined_call_operand.hbm [shape: f32[1,8,128], index: 4, kind: output, shape index: {}]  }
   0x1   :  { %10 = vsyncpa [#allocation6], 0 }
   0x2   :  { %11 = vsyncpa [#allocation4], 0  ;;  %s802_s15 = smov [#allocation5]   ;;  %s803_s17 = smov [#allocation2]  }
   0x3   :  { %s29_s16 = sshll.u32 %s802_s15, 4  ;;  %s17_s18 = sshll.u32 %s803_s17, 4  ;;  %s30_s16 = int_to_ptr.vmem [resolvable:$true] %s29_s16  ;;  %s18_s18 = int_to_ptr.vmem [resolvable:$true] %s17_s18 }
   0x4   :  { %s724_s19 = scalar_lea.vmem %s30_s16, 256  ;;  %p729_p1 = scmp.lt.s32.totalorder %s30_s16, %s30_s16 }
   0x5   :  { %p725_p0 = scmp.ne.s32.totalorder %s30_s16, %s724_s19  ;;  %p730_p2 = scmp.lt.s32.totalorder %s724_s19, %s724_s19 }
   0x7   :  { %p731_p3 = por %p730_p2, %p729_p1 }
   0x9   :  { %p732_p4 = pnand %p731_p3, %p725_p0 }
   0xb   :  { %735 = shalt.err (!%p732_p4)
}
   0xc   :  { %s804_s20 = smov 128   ;;  %s805_s21 = smov 8  }
   0xd   :  { %35 = dma.hbm_to_vmem [thread:$0]  %s898_s1, 256, %s30_s16, [#allocation6], %s804_s20, %s804_s20, %s805_s21  }
   0xe   :  { %s744_s24 = scalar_lea.vmem %s18_s18, 256  ;;  %p749_p6 = scmp.lt.s32.totalorder %s18_s18, %s18_s18 }
   0xf   :  { %p745_p5 = scmp.ne.s32.totalorder %s18_s18, %s744_s24  ;;  %p750_p7 = scmp.lt.s32.totalorder %s744_s24, %s744_s24 }
  0x11   :  { %p751_p8 = por %p750_p7, %p749_p6 }
  0x13   :  { %p752_p9 = pnand %p751_p8, %p745_p5 }
  0x15   :  { %755 = shalt.err (!%p752_p9)
}
  0x16   :  { %23 = dma.hbm_to_vmem [thread:$0]  %s897_s0, 256, %s18_s18, [#allocation3], %s804_s20, %s804_s20, %s805_s21  }
  0x17   :  { %s806_s27 = smov [#allocation7]  }
  0x18   :  { %s41_s28 = sshll.u32 %s806_s27, 4  ;;  %s42_s28 = int_to_ptr.vmem [resolvable:$true] %s41_s28 }
  0x19   :  { %s764_s29 = scalar_lea.vmem %s42_s28, 512  ;;  %p769_p11 = scmp.lt.s32.totalorder %s42_s28, %s42_s28 }
  0x1a   :  { %p765_p10 = scmp.ne.s32.totalorder %s42_s28, %s764_s29  ;;  %p770_p12 = scmp.lt.s32.totalorder %s764_s29, %s764_s29 }
  0x1c   :  { %p771_p13 = por %p770_p12, %p769_p11 }
  0x1e   :  { %p772_p0 = pnand %p771_p13, %p765_p10 }
  0x20   :  { %775 = shalt.err (!%p772_p0)
}
  0x21   :  { %47 = dma.hbm_to_vmem [thread:$0]  %s899_s2, 512, %s42_s28, [#allocation6], %s804_s20, %s804_s20, %s805_s21  }
  0x22   :  { %796 = dma.done.wait [#allocation3], 256  }
  0x23   :  { %797 = vsyncadd [#allocation3], 4294967040 }
  0x24   :  { %798 = dma.done.wait [#allocation6], 768  }
  0x25   :  { %799 = vsyncadd [#allocation6], 4294966528  ;;  %v74_v0 = vld [vmem:[#allocation5 + $0x8] sm:$0xff]  ;;  %v73_v1 = vld [vmem:[#allocation5] sm:$0xff]  ;;  %v807_v48 = vmov 0.0   ;;  %vm201_vm0 = vcmask 130048   ;;  %v196_v62 = vlaneseq }
  0x26   :  { %v59_v2 = vld [vmem:[#allocation2] sm:$0xff]  ;;  %v76_v3 = vmul.f32 %v74_v0, %v74_v0  ;;  %v60_v5 = vld [vmem:[#allocation2 + $0x8] sm:$0xff]  ;;  %v75_v6 = vmul.f32 %v73_v1, %v73_v1  ;;  %v90_v8 = vld [vmem:[#allocation7 + $0x18] sm:$0xff]  ;;  %vm374_vm15 = vcmask 261120   ;;  %s810_s5 = smov [#allocation8]  }
  0x27   :  { %v61_v4 = vmul.f32 %v59_v2, %v59_v2  ;;  %v62_v7 = vmul.f32 %v60_v5, %v60_v5  ;;  %v89_v9 = vld [vmem:[#allocation7 + $0x10] sm:$0xff]  ;;  %v94_v10 = vmul.f32 %v90_v8, %v90_v8  ;;  %v88_v12 = vld [vmem:[#allocation7 + $0x8] sm:$0xff]  ;;  %v87_v13 = vld [vmem:[#allocation7] sm:$0xff]  ;;  %s617_s6 = sshll.u32 %s810_s5, 4  ;;  %s618_s6 = int_to_ptr.vmem [resolvable:$true] %s617_s6 }
  0x28   :  { %79 = vadd.xlane.f32.xlu0 %v76_v3  ;;  %v93_v11 = vmul.f32 %v89_v9, %v89_v9  ;;  %v92_v14 = vmul.f32 %v88_v12, %v88_v12  ;;  %v91_v15 = vmul.f32 %v87_v13, %v87_v13  ;;  %s776_s7 = scalar_lea.vmem %s618_s6, 128  ;;  %p781_p2 = scmp.lt.s32.totalorder %s618_s6, %s618_s6 }
  0x29   :  { %63 = vadd.xlane.f32.xlu1 %v61_v4  ;;  %p777_p1 = scmp.ne.s32.totalorder %s618_s6, %s776_s7  ;;  %p782_p3 = scmp.lt.s32.totalorder %s776_s7, %s776_s7 }
  0x2b   :  { %p783_p4 = por %p782_p3, %p781_p2 }
  0x2c   :  { %77 = vadd.xlane.f32.xlu0 %v75_v6 }
  0x2d   :  { %65 = vadd.xlane.f32.xlu1 %v62_v7  ;;  %p784_p5 = pnand %p783_p4, %p777_p1 }
  0x30   :  { %101 = vadd.xlane.f32.xlu0 %v94_v10 }
  0x31   :  { %99 = vadd.xlane.f32.xlu1 %v93_v11 }
  0x34   :  { %97 = vadd.xlane.f32.xlu0 %v92_v14 }
  0x35   :  { %95 = vadd.xlane.f32.xlu1 %v91_v15 }
  0xb1   :  { %v80_v16 = vpop.xlane.xlu0 %79 }
  0xb2   :  { %v64_v17 = vpop.xlane.xlu1 %63  ;;  %v82_v18 = vmax.f32 %v80_v16, 1e-24 }
  0xb3   :  { %v67_v19 = vmax.f32 %v64_v17, 1e-24  ;;  %v808_v17 = vmov 1.0  }
  0xb4   :  { %698 = vrsqrt.f32 %v82_v18 }
  0xb5   :  { %v78_v20 = vpop.xlane.xlu0 %77  ;;  %700 = vrsqrt.f32 %v67_v19 }
  0xb6   :  { %v66_v21 = vpop.xlane.xlu1 %65  ;;  %v81_v22 = vmax.f32 %v78_v20, 1e-24 }
  0xb7   :  { %v68_v23 = vmax.f32 %v66_v21, 1e-24 }
  0xb8   :  { %702 = vrsqrt.f32 %v81_v22  ;;  %v867_v22 = vand.u32 127, %v196_v62 }
  0xb9   :  { %v102_v24 = vpop.xlane.xlu0 %101  ;;  %704 = vrsqrt.f32 %v68_v23 }
  0xba   :  { %v100_v25 = vpop.xlane.xlu1 %99  ;;  %v106_v26 = vmax.f32 %v102_v24, 1e-24  ;;  %vm367_vm12 = vcmp.ge.s32.totalorder %v867_v22, 16 }
  0xbb   :  { %v105_v27 = vmax.f32 %v100_v25, 1e-24  ;;  %vm631_vm14 = vmneg %vm367_vm12 }
  0xbc   :  { %706 = vrsqrt.f32 %v106_v26 }
  0xbd   :  { %708 = vrsqrt.f32 %v105_v27  ;;  %v98_v28 = vpop.xlane.xlu0 %97 }
  0xbe   :  { %v96_v29 = vpop.xlane.xlu1 %95  ;;  %v104_v30 = vmax.f32 %v98_v28, 1e-24 }
  0xbf   :  { %v103_v31 = vmax.f32 %v96_v29, 1e-24 }
  0xc0   :  { %710 = vrsqrt.f32 %v104_v30 }
  0xc1   :  { %v699_v32 = vpop.eup %698  ;;  %712 = vrsqrt.f32 %v103_v31 }
  0xc2   :  { %v701_v33 = vpop.eup %700  ;;  %v86_v34 = vmul.f32 %v699_v32, %v74_v0  ;;  %v848_v0 = vshrl.u32 %v196_v62, 7 }
  0xc3   :  { %v71_v35 = vmul.f32 %v701_v33, %v59_v2 }
  0xc4   :  { %657 = vmatprep.subr.mxu0 %v86_v34  ;;  %v198_v3 = vadd.s32 8, %v848_v0 }
  0xc5   :  { %v703_v36 = vpop.eup %702  ;;  %658 = vmatpush3.xpose.msra.mxu0 %v86_v34  ;;  %661 = vmatprep.mubr.f32.mxu0 %v71_v35 }
  0xc6   :  { %v705_v37 = vpop.eup %704  ;;  %v85_v38 = vmul.f32 %v703_v36, %v73_v1  ;;  %672 = vmatprep.mubr.f32.mxu1 %v71_v35 }
  0xc7   :  { %v72_v39 = vmul.f32 %v705_v37, %v60_v5 }
  0xc8   :  { %659 = vmatprep.subr.mxu0 %v85_v38 }
  0xc9   :  { %v707_v40 = vpop.eup %706  ;;  %660 = vmatpush3.xpose.msra.mxu0 %v85_v38 }
  0xca   :  { %v709_v41 = vpop.eup %708  ;;  %v114_v42 = vmul.f32 %v707_v40, %v90_v8  ;;  %675 = vmatprep.subr.mxu0 %v807_v48 }
  0xcb   :  { %v113_v43 = vmul.f32 %v709_v41, %v89_v9 }
  0xcc   :  { %662 = vmatmul.mubr.f32.vlgmr.msra.gmra.mxu0 %v72_v39  ;;  %664 = vmatprep.subr.mxu1 %v114_v42 }
  0xcd   :  { %v711_v44 = vpop.eup %710  ;;  %665 = vmatpush3.xpose.msra.mxu1 %v114_v42 }
  0xce   :  { %666 = vmatprep.subr.mxu1 %v113_v43  ;;  %v112_v45 = vmul.f32 %v711_v44, %v88_v12  ;;  %v713_v46 = vpop.eup %712 }
  0xcf   :  { %v111_v47 = vmul.f32 %v713_v46, %v87_v13 }
  0xd1   :  { %667 = vmatpush3.xpose.msra.mxu1 %v113_v43 }
  0xd2   :  { %668 = vmatprep.subr.mxu1 %v112_v45 }
  0xd5   :  { %669 = vmatpush3.xpose.msra.mxu1 %v112_v45 }
  0xd6   :  { %670 = vmatprep.subr.mxu1 %v111_v47 }
  0xd9   :  { %671 = vmatpush3.xpose.msra.mxu1 %v111_v47 }
  0xdc   :  { %673 = vmatmul.mubr.f32.vlgmr.msra.gmra.mxu1 %v72_v39 }
 0x18c   :  { %v663_v49 = vpop.f32.mrf.mxu0 }
 0x18d   :  { %v191_v50 = vmul.f32 2.0, %v663_v49 }
 0x18e   :  { %v181_v51 = vpop.f32.mrf.mxu0 }
 0x18f   :  { %v193_v52 = vsub.f32 2.0, %v191_v50  ;;  %v190_v53 = vmul.f32 2.0, %v181_v51 }
 0x191   :  { %v195_v54 = vmax.f32 %v193_v52, 0.0  ;;  %v192_v55 = vsub.f32 2.0, %v190_v53 }
 0x193   :  { %v194_v56 = vmax.f32 %v192_v55, 0.0  ;;  %v205_v57 = vsel %vm201_vm0, %v195_v54, inf }
 0x194   :  { %206 = vmin.xlane.f32.xlu1 %v205_v57 }
 0x195   :  { %v202_v58 = vsel %vm201_vm0, %v194_v56, inf }
 0x196   :  { %203 = vmin.xlane.f32.xlu0 %v202_v58  ;;  %v242_v59 = vmin.f32 %v202_v58, %v205_v57 }
 0x198   :  { %v243_v60 = vrot.slane %v242_v59, 4 }
 0x19a   :  { %v244_v61 = vmin.f32 %v242_v59, %v243_v60 }
 0x19c   :  { %v245_v63 = vrot.slane %v244_v61, 2  ;;  %v674_v33 = vpop.f32.mrf.mxu1 }
 0x19d   :  { %v362_v36 = vmul.f32 2.0, %v674_v33 }
 0x19e   :  { %v246_v1 = vmin.f32 %v244_v61, %v245_v63  ;;  %v352_v34 = vpop.f32.mrf.mxu1 }
 0x19f   :  { %v361_v35 = vmul.f32 2.0, %v352_v34  ;;  %v364_v40 = vsub.f32 2.0, %v362_v36 }
 0x1a0   :  { %v247_v2 = vrot.slane %v246_v1, 1 }
 0x1a1   :  { %v363_v37 = vsub.f32 2.0, %v361_v35  ;;  %v366_v47 = vmax.f32 %v364_v40, 0.0 }
 0x1a2   :  { %v851_v4 = vmin.f32 %v246_v1, %v247_v2 }
 0x1a3   :  { %v365_v41 = vmax.f32 %v363_v37, 0.0  ;;  %v385_v53 = vsel %vm367_vm12, %v366_v47, inf  ;;  %v373_v55 = vsel %vm631_vm14, %v366_v47, inf  ;;  %v636_v37 = vld [vmem:[%s900_s3] ss:$0 sm:$0xff] }
 0x1a4   :  { %vm249_vm1 = vcmp.eq.f32.partialorder %v194_v56, %v851_v4  ;;  %vm250_vm2 = vcmp.eq.f32.partialorder %v195_v54, %v851_v4  ;;  %v378_v57 = vsel %vm374_vm15, %v373_v55, inf }
 0x1a5   :  { %v251_v5 = vsel %vm249_vm1, %v848_v0, 16  ;;  %v252_v6 = vsel %vm250_vm2, %v198_v3, 16  ;;  %v384_v49 = vsel %vm367_vm12, %v365_v41, inf  ;;  %v372_v51 = vsel %vm631_vm14, %v365_v41, inf }
 0x1a6   :  { %v253_v7 = vsel %vm201_vm0, %v251_v5, 2147483647  ;;  %v254_v8 = vsel %vm201_vm0, %v252_v6, 2147483647  ;;  %v386_v52 = vsel %vm374_vm15, %v384_v49, inf  ;;  %vm809_vm1 = vmmov 0  }
 0x1a7   :  { %vm255_vm3 = vcmp.lt.s32.totalorder %v253_v7, %v254_v8  ;;  %679 = vmatprep.mubr.msk.f32.mxu0 %vm809_vm1, %v807_v48  ;;  %vm394_vm2 = vcmask 7168   ;;  %v535_v41 = vsub.s32 2, %v848_v0 }
 0x1a8   :  { %v256_v9 = vsel %vm255_vm3, %v253_v7, %v254_v8  ;;  %vm397_vm3 = vcmask 15360  }
 0x1a9   :  { %v257_v10 = vrot.slane %v256_v9, 4 }
 0x1ab   :  { %vm258_vm4 = vcmp.lt.s32.totalorder %v256_v9, %v257_v10 }
 0x1ac   :  { %v259_v11 = vsel %vm258_vm4, %v256_v9, %v257_v10  ;;  %vm530_vm4 = vcmp.eq.s32.totalorder %v867_v22, 0 }
 0x1ad   :  { %v260_v12 = vrot.slane %v259_v11, 2 }
 0x1af   :  { %vm261_vm5 = vcmp.lt.s32.totalorder %v259_v11, %v260_v12 }
 0x1b0   :  { %v262_v13 = vsel %vm261_vm5, %v259_v11, %v260_v12  ;;  %vm521_vm5 = vcmask 123904  }
 0x1b1   :  { %v263_v14 = vrot.slane %v262_v13, 1 }
 0x1b3   :  { %vm264_vm6 = vcmp.lt.s32.totalorder %v262_v13, %v263_v14 }
 0x1b4   :  { %v265_v15 = vsel %vm264_vm6, %v262_v13, %v263_v14 }
 0x1b5   :  { %vm267_vm7 = vcmp.eq.s32.totalorder %v198_v3, %v265_v15  ;;  %vm266_vm8 = vcmp.eq.s32.totalorder %v848_v0, %v265_v15 }
 0x1b6   :  { %v273_v16 = vsel %vm267_vm7, inf, %v195_v54  ;;  %676 = vmatpush3.msk.msra.mxu0 %vm267_vm7, %v808_v17  ;;  %v272_v18 = vsel %vm266_vm8, inf, %v194_v56 }
 0x1b7   :  { %v275_v19 = vsel %vm201_vm0, %v273_v16, inf  ;;  %677 = vmatprep.subr.mxu0 %v807_v48  ;;  %v274_v20 = vsel %vm201_vm0, %v272_v18, inf }
 0x1b8   :  { %v863_v21 = vmin.f32 %v274_v20, %v275_v19  ;;  %678 = vmatpush3.msk.msra.mxu0 %vm266_vm8, %v808_v17 }
 0x1b9   :  { %682 = vmatprep.subr.mxu0 %v807_v48 }
 0x1ba   :  { %v277_v18 = vrot.slane %v863_v21, 4 }
 0x1bc   :  { %v278_v19 = vmin.f32 %v863_v21, %v277_v18 }
 0x1be   :  { %v279_v20 = vrot.slane %v278_v19, 2 }
 0x21d   :  { %v207_v23 = vpop.xlane.xlu1 %206 }
 0x21e   :  { %vm209_vm9 = vcmp.eq.f32.partialorder %v195_v54, %v207_v23  ;;  %v375_v54 = vsel %vm374_vm15, %v372_v51, inf  ;;  %v280_v23 = vmin.f32 %v278_v19, %v279_v20 }
 0x21f   :  { %v211_v24 = vsel %vm209_vm9, %v867_v22, 16  ;;  %v204_v25 = vpop.xlane.xlu0 %203 }
 0x220   :  { %v227_v26 = vsel %vm201_vm0, %v211_v24, 2147483647  ;;  %vm208_vm10 = vcmp.eq.f32.partialorder %v194_v56, %v204_v25  ;;  %v389_v56 = vsel %vm374_vm15, %v385_v53, inf  ;;  %v281_v24 = vrot.slane %v280_v23, 1 }
 0x221   :  { %v210_v27 = vsel %vm208_vm10, %v867_v22, 16  ;;  %v229_v28 = vshra.s32 %v227_v26, 16  ;;  %v228_v38 = vand.u32 65535, %v227_v26 }
 0x222   :  { %v212_v29 = vsel %vm201_vm0, %v210_v27, 2147483647  ;;  %v282_v25 = vmin.f32 %v280_v23, %v281_v24 }
 0x223   :  { %v231_v30 = vcvt.s32.f32 %v229_v28  ;;  %v214_v31 = vshra.s32 %v212_v29, 16  ;;  %v213_v39 = vand.u32 65535, %v212_v29  ;;  %v230_v43 = vcvt.s32.f32 %v228_v38 }
 0x224   :  { %714 = vrcp.f32 %v282_v25 }
 0x225   :  { %232 = vmin.xlane.f32.xlu1 %v231_v30  ;;  %v216_v32 = vcvt.s32.f32 %v214_v31  ;;  %v215_v46 = vcvt.s32.f32 %v213_v39  ;;  %v505_v31 = vcvt.s32.f32 %v867_v22 }
 0x227   :  { %217 = vmin.xlane.f32.xlu0 %v216_v32 }
 0x2ae   :  { %v233_v42 = vpop.xlane.xlu1 %232 }
 0x2af   :  { %vm234_vm11 = vcmp.eq.f32.partialorder %v231_v30, %v233_v42  ;;  %v239_v59 = vcvt.f32.s32 %v233_v42  ;;  %v715_v30 = vpop.eup %714 }
 0x2b0   :  { %v218_v44 = vpop.xlane.xlu0 %217  ;;  %v235_v45 = vsel %vm234_vm11, %v230_v43, inf }
 0x2b1   :  { %236 = vmin.xlane.f32.xlu1 %v235_v45  ;;  %vm219_vm13 = vcmp.eq.f32.partialorder %v216_v32, %v218_v44  ;;  %v224_v58 = vcvt.f32.s32 %v218_v44  ;;  %v240_v2 = vshll.u32 %v239_v59, 16 }
 0x2b2   :  { %v220_v50 = vsel %vm219_vm13, %v215_v46, inf }
 0x2b3   :  { %221 = vmin.xlane.f32.xlu0 %v220_v50  ;;  %v225_v63 = vshll.u32 %v224_v58, 16 }
 0x2b5   :  { %387 = vmin.xlane.f32.xlu1 %v386_v52 }
 0x2b7   :  { %376 = vmin.xlane.f32.xlu0 %v375_v54 }
 0x2b9   :  { %390 = vmin.xlane.f32.xlu1 %v389_v56 }
 0x2bb   :  { %379 = vmin.xlane.f32.xlu0 %v378_v57 }
 0x33a   :  { %v237_v60 = vpop.xlane.xlu1 %236 }
 0x33b   :  { %v238_v61 = vcvt.f32.s32 %v237_v60 }
 0x33c   :  { %v222_v62 = vpop.xlane.xlu0 %221 }
 0x33d   :  { %v223_v1 = vcvt.f32.s32 %v222_v62  ;;  %v241_v6 = vadd.s32 %v240_v2, %v238_v61 }
 0x33e   :  { %v388_v3 = vpop.xlane.xlu1 %387 }
 0x33f   :  { %v226_v5 = vadd.s32 %v225_v63, %v223_v1  ;;  %v393_v11 = vcvt.s32.f32 %v241_v6 }
 0x340   :  { %v377_v7 = vpop.xlane.xlu0 %376 }
 0x341   :  { %v392_v8 = vcvt.s32.f32 %v226_v5  ;;  %v395_v9 = vsel %vm394_vm2, %v377_v7, %v388_v3 }
 0x342   :  { %v391_v12 = vpop.xlane.xlu1 %390 }
 0x343   :  { %v398_v10 = vsel %vm397_vm3, %v395_v9, %v392_v8 }
 0x344   :  { %v380_v13 = vpop.xlane.xlu0 %379  ;;  %400 = vxpose.xlu0.b32.start [1/2] (short) (narrow) %v398_v10, 8 }
 0x345   :  { %v396_v14 = vsel %vm394_vm2, %v380_v13, %v391_v12 }
 0x346   :  { %v399_v15 = vsel %vm397_vm3, %v396_v14, %v393_v11 }
 0x348   :  { %401 = vxpose.xlu0.b32.end [2/2] (short) (narrow) %v399_v15, 8 }
 0x3c0   :  { %v416_v16 = vpop.trf.xlu0 }
 0x3c1   :  { %680 = vmatmul.mubr.msk.f32.vlgmr.msra.gmra.mxu0 %vm201_vm0, %v416_v16 }
 0x3c2   :  { %686 = vmatprep.mubr.msk.f32.mxu0 %vm809_vm1, %v807_v48  ;;  %683 = vmatpush3.msk.msra.mxu0 %vm530_vm4, %v808_v17 }
 0x3c3   :  { %684 = vmatprep.subr.mxu0 %v807_v48 }
 0x3c4   :  { %685 = vmatpush3.msk.msra.mxu0 %vm530_vm4, %v808_v17  ;;  %v284_v17 = vmul.f32 %v715_v30, %v851_v4 }
 0x3c6   :  { %vm285_vm7 = vcmp.le.f32.partialorder %v284_v17, 0.81 }
 0x481   :  { %v501_v26 = vpop.f32.mrf.mxu0 }
 0x482   :  { %v518_v27 = vsub.f32 %v851_v4, %v501_v26  ;;  %vm506_vm6 = vcmp.eq.f32.partialorder %v501_v26, %v505_v31 }
 0x483   :  { %v681_v28 = vpop.f32.mrf.mxu0  ;;  %vm508_vm8 = vmand %vm506_vm6, %vm285_vm7 }
 0x484   :  { %v519_v29 = vadd.f32 1.1, %v518_v27  ;;  %v635_v38 = vsel %vm508_vm8, 1.0, %v807_v48 }
 0x485   :  { %v517_v40 = vmul.f32 %v636_v37, %v635_v38 }
 0x486   :  { %v520_v32 = vmax.f32 %v519_v29, 0.0 }
 0x488   :  { %v522_v33 = vsel %vm521_vm5, %v520_v32, 0.0 }
 0x489   :  { %v523_v34 = vrot.slane %v522_v33, 4 }
 0x48b   :  { %v524_v21 = vadd.f32 %v523_v34, %v522_v33 }
 0x48d   :  { %v525_v35 = vrot.slane %v524_v21, 2 }
 0x48f   :  { %v526_v36 = vadd.f32 %v525_v35, %v524_v21 }
 0x491   :  { %v527_v39 = vrot.slane %v526_v36, 1 }
 0x493   :  { %v528_v22 = vadd.f32 %v527_v39, %v526_v36 }
 0x495   :  { %v529_v4 = vmul.f32 %v528_v22, %v517_v40 }
 0x497   :  { %v536_v42 = vrot.slane %v529_v4, %v535_v41 }
 0x499   :  { %687 = vmatmul.mubr.msk.f32.vlgmr.msra.gmra.mxu0 %vm201_vm0, %v536_v42 }
 0x559   :  { %v606_v43 = vpop.f32.mrf.mxu0 }
 0x55a   :  { %610 = vst [vmem:[#allocation8] sm:$0xff] %v606_v43 }
 0x55b   :  { %v688_v44 = vpop.f32.mrf.mxu0 }
 0x55c   :  { %787 = shalt.err (!%p784_p5)
}
 0x55d   :  { %620 = dma.vmem_to_hbm [thread:$0]  %s618_s6, 128, %s901_s4, [#allocation4]  }
 0x55e   :  { %800 = dma.done.wait [#allocation4], 128  }
 0x55f   :  { %801 = vsyncadd [#allocation4], 4294967168 }
 0x560   :  { %624 = vsyncpa [#allocation3], 1 }
 0x561   :  { %625 = vsyncpa [#allocation6], 1 }
 0x562   :  { %626 = vsyncpa [#allocation4], 1 }

</bundles_post_ra>
